<compile_context>
chip_gen: v7x
topology: tpu7x:2x2x1
jax: 0.10.0
libtpu: 0.0.40
codegen_flags: <defaults>
</compile_context>

<pallas_src>
import numpy as np
import jax
import jax.numpy as jnp
from jax import lax
from jax.experimental import pallas as pl
from jax.experimental.pallas import tpu as pltpu

# ---- static architecture constants (from the nn.Module __init__) -----------
K = 3              # conv kernel size
C1 = 6             # conv1 out channels
C2 = 16            # conv2 out channels
L = 23             # input length (fc1 in_features 16*(L-4)=304 -> L=23)
L1 = L - K + 1     # 21
L2 = L1 - K + 1    # 19
F1 = C1 * L1       # 126  (conv1 output, channel-major flattened)
F2 = C2 * L2       # 304  (conv2 output, channel-major flattened == fc1 input)
H1 = 60
H2 = 20


def _round_up(n, m):
    return ((n + m - 1) // m) * m


# ---------------------------------------------------------------------------
# Kernel: one batch tile, everything resident in VMEM, all matmuls on the MXU.
# Layout: activations are (features, TB) -> batch on lanes (lane-dense).
# ---------------------------------------------------------------------------
def cnn_kernel(x_ref, a1_ref, c1_ref, a2_ref, c2_ref, a3_ref, c3_ref,
               a4_ref, c4_ref, a5_ref, c5_ref, o_ref):
    """
    x_ref  : (TB, 23)   input tile (batch rows)
    a1_ref : (126, 23)  conv1 folded as Toeplitz matrix (out-feature, in-pos)
    c1_ref : (126, 1)   conv1 bias expanded per output position
    a2_ref : (304, 126) conv2 folded as Toeplitz matrix
    c2_ref : (304, 1)
    a3_ref : (60, 304)  fc1 weight
    c3_ref : (60, 1)
    a4_ref : (20, 60)   fc2 weight
    c4_ref : (20, 1)
    a5_ref : (1, 20)    fc3 weight
    c5_ref : (1, 1)
    o_ref  : (1, TB)    sigmoid output, batch on lanes
    """
    x = x_ref[...]                                              # (TB, 23)

    # conv1 + ReLU : (126,23) x (TB,23)^T -> (126, TB)   (NT matmul on MXU)
    h = lax.dot_general(a1_ref[...], x, (((1,), (1,)), ((), ())),
                        preferred_element_type=jnp.float32)
    h = jnp.maximum(h + c1_ref[...], 0.0)                       # (126, TB)

    # conv2 + ReLU : produces the torch.flatten(x,1) layout directly
    h = jnp.dot(a2_ref[...], h, preferred_element_type=jnp.float32)
    h = jnp.maximum(h + c2_ref[...], 0.0)                       # (304, TB)

    # fc1 + ReLU (single fused 304-contraction matmul)
    h = jnp.dot(a3_ref[...], h, preferred_element_type=jnp.float32)
    h = jnp.maximum(h + c3_ref[...], 0.0)                       # (60, TB)

    # fc2 + ReLU
    h = jnp.dot(a4_ref[...], h, preferred_element_type=jnp.float32)
    h = jnp.maximum(h + c4_ref[...], 0.0)                       # (20, TB)

    # fc3 + sigmoid
    h = jnp.dot(a5_ref[...], h, preferred_element_type=jnp.float32)
    o_ref[...] = jax.nn.sigmoid(h + c5_ref[...])                # (1, TB)


# ---------------------------------------------------------------------------
# Wrapper-side weight folding (pure layout prep, no per-batch compute)
# ---------------------------------------------------------------------------
def _fold_conv1(w1, b1):
    """w1 (6,1,3), b1 (6,) -> A (126,23), c (126,1) with row = co*L1 + j."""
    rows, cols, src = [], [], []
    for co in range(C1):
        for j in range(L1):
            for k in range(K):
                rows.append(co * L1 + j)
                cols.append(j + k)
                src.append(co * K + k)
    A = jnp.zeros((F1, L), jnp.float32)
    A = A.at[np.array(rows), np.array(cols)].add(
        w1.reshape(-1)[np.array(src)])
    c = jnp.repeat(b1, L1).reshape(F1, 1)
    return A, c


def _fold_conv2(w2, b2):
    """w2 (16,6,3), b2 (16,) -> A (304,126), c (304,1); row = co*L2 + j
    (== torch.flatten channel-major order), col = ci*L1 + (j + k)."""
    rows, cols, src = [], [], []
    for co in range(C2):
        for j in range(L2):
            for ci in range(C1):
                for k in range(K):
                    rows.append(co * L2 + j)
                    cols.append(ci * L1 + j + k)
                    src.append((co * C1 + ci) * K + k)
    A = jnp.zeros((F2, F1), jnp.float32)
    A = A.at[np.array(rows), np.array(cols)].add(
        w2.reshape(-1)[np.array(src)])
    c = jnp.repeat(b2, L2).reshape(F2, 1)
    return A, c


def init_params(key):
    """Deterministic parameters, PyTorch-default-like uniform(-1/sqrt(fan_in))."""
    ks = jax.random.split(key, 10)

    def u(k, shape, fan_in):
        b = 1.0 / np.sqrt(fan_in)
        return jax.random.uniform(k, shape, jnp.float32, -b, b)

    p = {}
    p["w1"] = u(ks[0], (C1, 1, K), 1 * K)        # conv1.weight (6,1,3)
    p["b1"] = u(ks[1], (C1,), 1 * K)
    p["w2"] = u(ks[2], (C2, C1, K), C1 * K)      # conv2.weight (16,6,3)
    p["b2"] = u(ks[3], (C2,), C1 * K)
    p["W1"] = u(ks[4], (F2, H1), F2)             # fc1.weight.T (304,60)
    p["B1"] = u(ks[5], (H1,), F2)
    p["W2"] = u(ks[6], (H1, H2), H1)             # fc2.weight.T (60,20)
    p["B2"] = u(ks[7], (H2,), H1)
    p["W3"] = u(ks[8], (H2, 1), H2)              # fc3.weight.T (20,1)
    p["B3"] = u(ks[9], (1,), H2)
    return p


def cnn_net_forward(input_, p):
    """Mirrors cnn_net.forward: input_ = (x, guide, target); guide/target unused."""
    x = jnp.asarray(input_[0], jnp.float32)           # (B, 23)
    B = x.shape[0]

    # Fold convs into dense matrices; transpose fc weights to (out, in).
    A1, c1 = _fold_conv1(p["w1"], p["b1"])            # (126,23), (126,1)
    A2, c2 = _fold_conv2(p["w2"], p["b2"])            # (304,126), (304,1)
    A3, c3 = p["W1"].T, p["B1"].reshape(H1, 1)        # (60,304), (60,1)
    A4, c4 = p["W2"].T, p["B2"].reshape(H2, 1)        # (20,60), (20,1)
    A5, c5 = p["W3"].T, p["B3"].reshape(1, 1)         # (1,20), (1,1)

    # Batch tile: lane-aligned (multiple of 128), pipelined over the grid.
    TB = min(512, _round_up(max(B, 1), 128))
    B_pad = _round_up(B, TB)
    xp = jnp.pad(x, ((0, B_pad - B), (0, 0)))

    def full_spec(a):
        # whole-array block, constant index -> loaded once, resident in VMEM
        return pl.BlockSpec(a.shape, lambda i: (0, 0))

    out = pl.pallas_call(
        cnn_kernel,
        out_shape=jax.ShapeDtypeStruct((1, B_pad), jnp.float32),
        grid=(B_pad // TB,),
        in_specs=[
            pl.BlockSpec((TB, L), lambda i: (i, 0)),   # x: streamed per tile
            full_spec(A1), full_spec(c1),
            full_spec(A2), full_spec(c2),
            full_spec(A3), full_spec(c3),
            full_spec(A4), full_spec(c4),
            full_spec(A5), full_spec(c5),
        ],
        out_specs=pl.BlockSpec((1, TB), lambda i: (0, i)),   # lane-dense output
        compiler_params=pltpu.CompilerParams(
            dimension_semantics=("parallel",)),
    )(xp, A1, c1, A2, c2, A3, c3, A4, c4, A5, c5)

    return out[0, :B].reshape(B, 1)


# ---------------------------------------------------------------------------
# Independent float64 NumPy reference of the original PyTorch forward
# ---------------------------------------------------------------------------
def ref_forward_np(x, p):
    x = np.asarray(x, np.float64)
    w1 = np.asarray(p["w1"], np.float64); b1 = np.asarray(p["b1"], np.float64)
    w2 = np.asarray(p["w2"], np.float64); b2 = np.asarray(p["b2"], np.float64)
    B = x.shape[0]
    y1 = np.zeros((B, C1, L1))
    for co in range(C1):
        for k in range(K):
            y1[:, co, :] += w1[co, 0, k] * x[:, k:k + L1]
        y1[:, co, :] += b1[co]
    y1 = np.maximum(y1, 0.0)
    y2 = np.zeros((B, C2, L2))
    for co in range(C2):
        for ci in range(C1):
            for k in range(K):
                y2[:, co, :] += w2[co, ci, k] * y1[:, ci, k:k + L2]
        y2[:, co, :] += b2[co]
    y2 = np.maximum(y2, 0.0)
    flat = y2.reshape(B, -1)                                 # torch.flatten(x, 1)
    h = np.maximum(flat @ np.asarray(p["W1"], np.float64)
                   + np.asarray(p["B1"], np.float64), 0.0)
    h = np.maximum(h @ np.asarray(p["W2"], np.float64)
                   + np.asarray(p["B2"], np.float64), 0.0)
    h = h @ np.asarray(p["W3"], np.float64) + np.asarray(p["B3"], np.float64)
    return 1.0 / (1.0 + np.exp(-h))


if __name__ == "__main__":
    key = jax.random.PRNGKey(0)
    k_param, k_x, k_g, k_t, k_x2 = jax.random.split(key, 5)

    params = init_params(k_param)

    # small-shape check (single grid block)
    Bsz = 4
    x = jax.random.normal(k_x, (Bsz, L), jnp.float32)        # (4, 23)
    guide = jax.random.normal(k_g, (Bsz, L), jnp.float32)    # unused by forward
    target = jax.random.normal(k_t, (Bsz, 1), jnp.float32)   # unused by forward
    out = jax.block_until_ready(cnn_net_forward((x, guide, target), params))
    assert out.shape == (Bsz, 1) and out.dtype == jnp.float32
    np.testing.assert_allclose(np.asarray(out), ref_forward_np(x, params),
                               rtol=5e-2, atol=5e-3)

    # multi-block grid check (exercises the batch-tile pipeline + padding)
    B2 = 1500
    x2 = jax.random.normal(k_x2, (B2, L), jnp.float32)
    out2 = jax.block_until_ready(cnn_net_forward((x2, guide, target), params))
    assert out2.shape == (B2, 1)
    np.testing.assert_allclose(np.asarray(out2), ref_forward_np(x2, params),
                               rtol=5e-2, atol=5e-3)

    print("KERNEL_OK")
</pallas_src>

<mosaic_0001>
module attributes {stable_mosaic.version = 11 : i64} {
  func.func @cnn_kernel(%arg0: i32, %arg1: memref<128x23xf32, #tpu.memory_space<vmem>>, %arg2: memref<126x23xf32, #tpu.memory_space<vmem>>, %arg3: memref<126x1xf32, #tpu.memory_space<vmem>>, %arg4: memref<304x126xf32, #tpu.memory_space<vmem>>, %arg5: memref<304x1xf32, #tpu.memory_space<vmem>>, %arg6: memref<60x304xf32, #tpu.memory_space<vmem>>, %arg7: memref<60x1xf32, #tpu.memory_space<vmem>>, %arg8: memref<20x60xf32, #tpu.memory_space<vmem>>, %arg9: memref<20x1xf32, #tpu.memory_space<vmem>>, %arg10: memref<1x20xf32, #tpu.memory_space<vmem>>, %arg11: memref<1x1xf32, #tpu.memory_space<vmem>>, %arg12: memref<1x128xf32, #tpu.memory_space<vmem>>) attributes {dimension_semantics = [#tpu.dimension_semantics<parallel>], iteration_bounds = array<i64: 1>, scalar_prefetch = 0 : i64, scratch_operands = 0 : i64, tpu.core_type = #tpu.core_type<tc>, window_params = [{transform_indices = @transform_0, window_bounds = array<i64: 128, 23>}, {pipeline_mode = #tpu.pipeline_mode<synchronous>, transform_indices = @transform_1, window_bounds = array<i64: 126, 23>}, {pipeline_mode = #tpu.pipeline_mode<synchronous>, transform_indices = @transform_2, window_bounds = array<i64: 126, 1>}, {pipeline_mode = #tpu.pipeline_mode<synchronous>, transform_indices = @transform_3, window_bounds = array<i64: 304, 126>}, {pipeline_mode = #tpu.pipeline_mode<synchronous>, transform_indices = @transform_4, window_bounds = array<i64: 304, 1>}, {pipeline_mode = #tpu.pipeline_mode<synchronous>, transform_indices = @transform_5, window_bounds = array<i64: 60, 304>}, {pipeline_mode = #tpu.pipeline_mode<synchronous>, transform_indices = @transform_6, window_bounds = array<i64: 60, 1>}, {pipeline_mode = #tpu.pipeline_mode<synchronous>, transform_indices = @transform_7, window_bounds = array<i64: 20, 60>}, {pipeline_mode = #tpu.pipeline_mode<synchronous>, transform_indices = @transform_8, window_bounds = array<i64: 20, 1>}, {pipeline_mode = #tpu.pipeline_mode<synchronous>, transform_indices = @transform_9, window_bounds = array<i64: 1, 20>}, {pipeline_mode = #tpu.pipeline_mode<synchronous>, transform_indices = @transform_10, window_bounds = array<i64: 1, 1>}, {transform_indices = @transform_11, window_bounds = array<i64: 1, 128>}]} {
    %c0 = arith.constant 0 : index
    %c0_0 = arith.constant 0 : index
    %0 = vector.load %arg1[%c0, %c0_0] : memref<128x23xf32, #tpu.memory_space<vmem>>, vector<128x23xf32>
    %c0_1 = arith.constant 0 : index
    %c0_2 = arith.constant 0 : index
    %1 = vector.load %arg2[%c0_1, %c0_2] : memref<126x23xf32, #tpu.memory_space<vmem>>, vector<126x23xf32>
    %cst = arith.constant dense<0.000000e+00> : vector<126x128xf32>
    %2 = tpu.matmul %1, %0, %cst {dimension_numbers = #tpu.dot_dimension_numbers<[1], [1], [0], [0], [0, 0, 1, 0], [], []>} : vector<126x23xf32>, vector<128x23xf32>, vector<126x128xf32> -> vector<126x128xf32>
    %c0_3 = arith.constant 0 : index
    %c0_4 = arith.constant 0 : index
    %3 = vector.load %arg3[%c0_3, %c0_4] : memref<126x1xf32, #tpu.memory_space<vmem>>, vector<126x1xf32>
    %4 = vector.broadcast %3 : vector<126x1xf32> to vector<126x128xf32>
    %5 = arith.addf %2, %4 : vector<126x128xf32>
    %cst_5 = arith.constant 0.000000e+00 : f32
    %6 = vector.broadcast %cst_5 : f32 to vector<126x128xf32>
    %7 = arith.maximumf %5, %6 : vector<126x128xf32>
    %c0_6 = arith.constant 0 : index
    %c0_7 = arith.constant 0 : index
    %8 = vector.load %arg4[%c0_6, %c0_7] : memref<304x126xf32, #tpu.memory_space<vmem>>, vector<304x126xf32>
    %cst_8 = arith.constant dense<0.000000e+00> : vector<304x128xf32>
    %9 = tpu.matmul %8, %7, %cst_8 {dimension_numbers = #tpu.dot_dimension_numbers<[1], [0], [0], [1], [0, 0, 1, 1], [], []>} : vector<304x126xf32>, vector<126x128xf32>, vector<304x128xf32> -> vector<304x128xf32>
    %c0_9 = arith.constant 0 : index
    %c0_10 = arith.constant 0 : index
    %10 = vector.load %arg5[%c0_9, %c0_10] : memref<304x1xf32, #tpu.memory_space<vmem>>, vector<304x1xf32>
    %11 = vector.broadcast %10 : vector<304x1xf32> to vector<304x128xf32>
    %12 = arith.addf %9, %11 : vector<304x128xf32>
    %cst_11 = arith.constant 0.000000e+00 : f32
    %13 = vector.broadcast %cst_11 : f32 to vector<304x128xf32>
    %14 = arith.maximumf %12, %13 : vector<304x128xf32>
    %c0_12 = arith.constant 0 : index
    %c0_13 = arith.constant 0 : index
    %15 = vector.load %arg6[%c0_12, %c0_13] : memref<60x304xf32, #tpu.memory_space<vmem>>, vector<60x304xf32>
    %cst_14 = arith.constant dense<0.000000e+00> : vector<60x128xf32>
    %16 = tpu.matmul %15, %14, %cst_14 {dimension_numbers = #tpu.dot_dimension_numbers<[1], [0], [0], [1], [0, 0, 1, 1], [], []>} : vector<60x304xf32>, vector<304x128xf32>, vector<60x128xf32> -> vector<60x128xf32>
    %c0_15 = arith.constant 0 : index
    %c0_16 = arith.constant 0 : index
    %17 = vector.load %arg7[%c0_15, %c0_16] : memref<60x1xf32, #tpu.memory_space<vmem>>, vector<60x1xf32>
    %18 = vector.broadcast %17 : vector<60x1xf32> to vector<60x128xf32>
    %19 = arith.addf %16, %18 : vector<60x128xf32>
    %cst_17 = arith.constant 0.000000e+00 : f32
    %20 = vector.broadcast %cst_17 : f32 to vector<60x128xf32>
    %21 = arith.maximumf %19, %20 : vector<60x128xf32>
    %c0_18 = arith.constant 0 : index
    %c0_19 = arith.constant 0 : index
    %22 = vector.load %arg8[%c0_18, %c0_19] : memref<20x60xf32, #tpu.memory_space<vmem>>, vector<20x60xf32>
    %cst_20 = arith.constant dense<0.000000e+00> : vector<20x128xf32>
    %23 = tpu.matmul %22, %21, %cst_20 {dimension_numbers = #tpu.dot_dimension_numbers<[1], [0], [0], [1], [0, 0, 1, 1], [], []>} : vector<20x60xf32>, vector<60x128xf32>, vector<20x128xf32> -> vector<20x128xf32>
    %c0_21 = arith.constant 0 : index
    %c0_22 = arith.constant 0 : index
    %24 = vector.load %arg9[%c0_21, %c0_22] : memref<20x1xf32, #tpu.memory_space<vmem>>, vector<20x1xf32>
    %25 = vector.broadcast %24 : vector<20x1xf32> to vector<20x128xf32>
    %26 = arith.addf %23, %25 : vector<20x128xf32>
    %cst_23 = arith.constant 0.000000e+00 : f32
    %27 = vector.broadcast %cst_23 : f32 to vector<20x128xf32>
    %28 = arith.maximumf %26, %27 : vector<20x128xf32>
    %c0_24 = arith.constant 0 : index
    %c0_25 = arith.constant 0 : index
    %29 = vector.load %arg10[%c0_24, %c0_25] : memref<1x20xf32, #tpu.memory_space<vmem>>, vector<1x20xf32>
    %cst_26 = arith.constant dense<0.000000e+00> : vector<1x128xf32>
    %30 = tpu.matmul %29, %28, %cst_26 {dimension_numbers = #tpu.dot_dimension_numbers<[1], [0], [0], [1], [0, 0, 1, 1], [], []>} : vector<1x20xf32>, vector<20x128xf32>, vector<1x128xf32> -> vector<1x128xf32>
    %c0_27 = arith.constant 0 : index
    %c0_28 = arith.constant 0 : index
    %31 = vector.load %arg11[%c0_27, %c0_28] : memref<1x1xf32, #tpu.memory_space<vmem>>, vector<1x1xf32>
    %32 = vector.broadcast %31 : vector<1x1xf32> to vector<1x128xf32>
    %33 = arith.addf %30, %32 : vector<1x128xf32>
    %34 = arith.negf %33 : vector<1x128xf32>
    %35 = math.exp %34 : vector<1x128xf32>
    %cst_29 = arith.constant 1.000000e+00 : f32
    %36 = vector.broadcast %cst_29 : f32 to vector<1x128xf32>
    %37 = arith.addf %36, %35 : vector<1x128xf32>
    %38 = arith.divf %36, %37 : vector<1x128xf32>
    %c0_30 = arith.constant 0 : index
    %c0_31 = arith.constant 0 : index
    %39 = vector.load %arg12[%c0_30, %c0_31] : memref<1x128xf32, #tpu.memory_space<vmem>>, vector<1x128xf32>
    tpu.vector_store %arg12[%c0_30, %c0_31], %38 {strides = array<i32>} : memref<1x128xf32, #tpu.memory_space<vmem>>, vector<1x128xf32>,
    return
  }
  func.func @transform_0(%arg0: i32) -> (i32, i32) {
    %c0_i32 = arith.constant 0 : i32
    %c0_i32_0 = arith.constant 0 : i32
    return %arg0, %c0_i32 : i32, i32
  }
  func.func @transform_1(%arg0: i32) -> (i32, i32) {
    %c0_i32 = arith.constant 0 : i32
    %c0_i32_0 = arith.constant 0 : i32
    %c0_i32_1 = arith.constant 0 : i32
    return %c0_i32, %c0_i32_0 : i32, i32
  }
  func.func @transform_2(%arg0: i32) -> (i32, i32) {
    %c0_i32 = arith.constant 0 : i32
    %c0_i32_0 = arith.constant 0 : i32
    %c0_i32_1 = arith.constant 0 : i32
    return %c0_i32, %c0_i32_0 : i32, i32
  }
  func.func @transform_3(%arg0: i32) -> (i32, i32) {
    %c0_i32 = arith.constant 0 : i32
    %c0_i32_0 = arith.constant 0 : i32
    %c0_i32_1 = arith.constant 0 : i32
    return %c0_i32, %c0_i32_0 : i32, i32
  }
  func.func @transform_4(%arg0: i32) -> (i32, i32) {
    %c0_i32 = arith.constant 0 : i32
    %c0_i32_0 = arith.constant 0 : i32
    %c0_i32_1 = arith.constant 0 : i32
    return %c0_i32, %c0_i32_0 : i32, i32
  }
  func.func @transform_5(%arg0: i32) -> (i32, i32) {
    %c0_i32 = arith.constant 0 : i32
    %c0_i32_0 = arith.constant 0 : i32
    %c0_i32_1 = arith.constant 0 : i32
    return %c0_i32, %c0_i32_0 : i32, i32
  }
  func.func @transform_6(%arg0: i32) -> (i32, i32) {
    %c0_i32 = arith.constant 0 : i32
    %c0_i32_0 = arith.constant 0 : i32
    %c0_i32_1 = arith.constant 0 : i32
    return %c0_i32, %c0_i32_0 : i32, i32
  }
  func.func @transform_7(%arg0: i32) -> (i32, i32) {
    %c0_i32 = arith.constant 0 : i32
    %c0_i32_0 = arith.constant 0 : i32
    %c0_i32_1 = arith.constant 0 : i32
    return %c0_i32, %c0_i32_0 : i32, i32
  }
  func.func @transform_8(%arg0: i32) -> (i32, i32) {
    %c0_i32 = arith.constant 0 : i32
    %c0_i32_0 = arith.constant 0 : i32
    %c0_i32_1 = arith.constant 0 : i32
    return %c0_i32, %c0_i32_0 : i32, i32
  }
  func.func @transform_9(%arg0: i32) -> (i32, i32) {
    %c0_i32 = arith.constant 0 : i32
    %c0_i32_0 = arith.constant 0 : i32
    %c0_i32_1 = arith.constant 0 : i32
    return %c0_i32, %c0_i32_0 : i32, i32
  }
  func.func @transform_10(%arg0: i32) -> (i32, i32) {
    %c0_i32 = arith.constant 0 : i32
    %c0_i32_0 = arith.constant 0 : i32
    %c0_i32_1 = arith.constant 0 : i32
    return %c0_i32, %c0_i32_0 : i32, i32
  }
  func.func @transform_11(%arg0: i32) -> (i32, i32) {
    %c0_i32 = arith.constant 0 : i32
    %c0_i32_0 = arith.constant 0 : i32
    return %c0_i32, %arg0 : i32, i32
  }
}

</mosaic_0001>

<bundles_post_ra>
// kernel: tpu_custom_call.1
= control target key start
LH: loop header
LB: loop body
LE: loop exit
PB: predicated region body
PF: predicated region fallthrough
CT: control target
= control target key end

     0   :  { %s3045_s0 = inlined_call_operand.vmem [shape: f32[128,23], index: 0, kind: input, shape index: {}]   ;;  %s3046_s1 = inlined_call_operand.vmem [shape: f32[126,23], index: 1, kind: input, shape index: {}]   ;;  %s3047_s2 = inlined_call_operand.vmem [shape: f32[126,1], index: 2, kind: input, shape index: {}]   ;;  %s3048_s3 = inlined_call_operand.vmem [shape: f32[304,126], index: 3, kind: input, shape index: {}]   ;;  %s3049_s4 = inlined_call_operand.vmem [shape: f32[304,1], index: 4, kind: input, shape index: {}]   ;;  %s3050_s5 = inlined_call_operand.vmem [shape: f32[60,304], index: 5, kind: input, shape index: {}]   ;;  %s3051_s6 = inlined_call_operand.vmem [shape: f32[60,1], index: 6, kind: input, shape index: {}]   ;;  %s3052_s7 = inlined_call_operand.vmem [shape: f32[20,60], index: 7, kind: input, shape index: {}]   ;;  %s3053_s8 = inlined_call_operand.vmem [shape: f32[20,1], index: 8, kind: input, shape index: {}]   ;;  %s3054_s9 = inlined_call_operand.vmem [shape: f32[1,20], index: 9, kind: input, shape index: {}]   ;;  %s3055_s10 = inlined_call_operand.<no memory space> [shape: f32[1,1], index: 10, kind: input, shape index: {}]   ;;  %s3056_s11 = inlined_call_operand.hbm [shape: f32[1,128], index: 11, kind: output, shape index: {}]  }
   0x1   :  { %v16_v0 = vstv %s3055_s10 }
   0x2   :  { %17 = vst [vmem:[#allocation2] sm:$0x1] %v16_v0 }
   0x3   :  { %v41_v1 = vld [vmem:[%s3045_s0] sm:$0xff]  ;;  %v42_v2 = vld [vmem:[%s3045_s0 + $0x8] sm:$0xff]  ;;  %vm169_vm0 = vcmask 187392   ;;  %v43_v3 = vld [vmem:[%s3045_s0 + $0x10] sm:$0xff]  ;;  %v2285_v7 = vmov 0  }
   0x4   :  { %v2107_v4 = vpack.c.bf16 %v42_v2, %v41_v1  ;;  %vm2365_vm1 = vmpackc.low %vm169_vm0, %vm169_vm0  ;;  %v44_v6 = vld [vmem:[%s3045_s0 + $0x18] sm:$0xff]  ;;  %2255 = vset.pattern.permute.xlu0 %v2285_v7  ;;  %2256 = vset.pattern.permute.xlu1 %v2285_v7  ;;  %v73_v9 = vld [vmem:[%s3047_s2] sm:$0xff] }
   0x5   :  { %v2113_v8 = vpack.c.bf16 %v44_v6, %v43_v3  ;;  %v75_v10 = vld [vmem:[%s3047_s2 + $0x10] sm:$0xff]  ;;  %91 = vperm.xlu0 %2255, %v73_v9   ;;  %v74_v11 = vld [vmem:[%s3047_s2 + $0x8] sm:$0xff]  ;;  %v76_v12 = vld [vmem:[%s3047_s2 + $0x18] sm:$0xff] }
   0x6   :  { %2109 = vmatprep.subr.msk.bf16.mxu0 %vm2365_vm1, %v2107_v4  ;;  %101 = vperm.xlu1 %2256, %v75_v10   ;;  %v45_v13 = vld [vmem:[%s3045_s0 + $0x20] sm:$0xff]  ;;  %v46_v14 = vld [vmem:[%s3045_s0 + $0x28] sm:$0xff]  ;;  %v79_v18 = vld [vmem:[%s3047_s2 + $0x30] sm:$0xff] }
   0x7   :  { %2112 = vmatpush3.bf16.xpose.msk.msra.mxu0 %vm2365_vm1, %v2107_v4  ;;  %v77_v15 = vld [vmem:[%s3047_s2 + $0x20] sm:$0xff]  ;;  %v2119_v16 = vpack.c.bf16 %v46_v14, %v45_v13  ;;  %v78_v17 = vld [vmem:[%s3047_s2 + $0x28] sm:$0xff]  ;;  %v80_v19 = vld [vmem:[%s3047_s2 + $0x38] sm:$0xff] }
   0x8   :  { %2115 = vmatprep.subr.msk.bf16.mxu0 %vm2365_vm1, %v2113_v8  ;;  %v57_v20 = vld [vmem:[%s3046_s1] sm:$0xff]  ;;  %v47_v21 = vld [vmem:[%s3045_s0 + $0x30] sm:$0xff]  ;;  %v48_v22 = vld [vmem:[%s3045_s0 + $0x38] sm:$0xff] }
   0x9   :  { %96 = vperm.xlu0 %2255, %v74_v11   ;;  %1936 = vmatprep.mubr.msk.f32.mxu0 %vm169_vm0, %v57_v20  ;;  %v81_v23 = vld [vmem:[%s3047_s2 + $0x40] sm:$0xff]  ;;  %v2125_v24 = vpack.c.bf16 %v48_v22, %v47_v21  ;;  %v82_v25 = vld [vmem:[%s3047_s2 + $0x48] sm:$0xff]  ;;  %v83_v26 = vld [vmem:[%s3047_s2 + $0x50] sm:$0xff] }
   0xa   :  { %106 = vperm.xlu1 %2256, %v76_v12   ;;  %v84_v27 = vld [vmem:[%s3047_s2 + $0x58] sm:$0xff]  ;;  %v49_v28 = vld [vmem:[%s3045_s0 + $0x40] sm:$0xff]  ;;  %v50_v29 = vld [vmem:[%s3045_s0 + $0x48] sm:$0xff] }
   0xb   :  { %v85_v30 = vld [vmem:[%s3047_s2 + $0x60] sm:$0xff]  ;;  %v2131_v31 = vpack.c.bf16 %v50_v29, %v49_v28  ;;  %v86_v32 = vld [vmem:[%s3047_s2 + $0x68] sm:$0xff]  ;;  %v87_v33 = vld [vmem:[%s3047_s2 + $0x70] sm:$0xff] }
   0xc   :  { %v88_v34 = vld [vmem:[%s3047_s2 + $0x78] sm:$0x3f]  ;;  %v51_v35 = vld [vmem:[%s3045_s0 + $0x50] sm:$0xff]  ;;  %v481_v37 = vld [vmem:[%s3049_s4 + $0x80] sm:$0xff] }
   0xd   :  { %111 = vperm.xlu0 %2255, %v77_v15   ;;  %v52_v36 = vld [vmem:[%s3045_s0 + $0x58] sm:$0xff]  ;;  %v482_v39 = vld [vmem:[%s3049_s4 + $0x88] sm:$0xff] }
   0xe   :  { %116 = vperm.xlu1 %2256, %v78_v17   ;;  %v2137_v38 = vpack.c.bf16 %v52_v36, %v51_v35 }
   0xf   :  { %2118 = vmatpush3.bf16.xpose.msk.msra.mxu0 %vm2365_vm1, %v2113_v8 }
  0x10   :  { %2121 = vmatprep.subr.msk.bf16.mxu0 %vm2365_vm1, %v2119_v16 }
  0x11   :  { %121 = vperm.xlu0 %2255, %v79_v18  }
  0x12   :  { %126 = vperm.xlu1 %2256, %v80_v19  }
  0x15   :  { %131 = vperm.xlu0 %2255, %v81_v23  }
  0x16   :  { %136 = vperm.xlu1 %2256, %v82_v25  }
  0x17   :  { %2124 = vmatpush3.bf16.xpose.msk.msra.mxu0 %vm2365_vm1, %v2119_v16 }
  0x18   :  { %2127 = vmatprep.subr.msk.bf16.mxu0 %vm2365_vm1, %v2125_v24 }
  0x19   :  { %141 = vperm.xlu0 %2255, %v83_v26  }
  0x1a   :  { %146 = vperm.xlu1 %2256, %v84_v27  }
  0x1d   :  { %151 = vperm.xlu0 %2255, %v85_v30  }
  0x1e   :  { %156 = vperm.xlu1 %2256, %v86_v32  }
  0x1f   :  { %2130 = vmatpush3.bf16.xpose.msk.msra.mxu0 %vm2365_vm1, %v2125_v24 }
  0x20   :  { %2133 = vmatprep.subr.msk.bf16.mxu0 %vm2365_vm1, %v2131_v31 }
  0x21   :  { %161 = vperm.xlu0 %2255, %v87_v33  }
  0x22   :  { %166 = vperm.xlu1 %2256, %v88_v34  }
  0x23   :  { %18 = vsyncpa [#allocation4], 0  ;;  %v465_v40 = vld [vmem:[%s3049_s4] sm:$0xff]  ;;  %v466_v41 = vld [vmem:[%s3049_s4 + $0x8] sm:$0xff]  ;;  %vm693_vm2 = vcmask 1031168   ;;  %vm808_vm3 = vcmask 1045504  }
  0x24   :  { %v53_v42 = vld [vmem:[%s3045_s0 + $0x60] sm:$0xff]  ;;  %v54_v43 = vld [vmem:[%s3045_s0 + $0x68] sm:$0xff]  ;;  %v483_v44 = vld [vmem:[%s3049_s4 + $0x90] sm:$0xff]  ;;  %vm2286_vm4 = vmmov 1   ;;  %vm1177_vm6 = vcmask 392192   ;;  %vm2288_vm7 = vmmov 0  }
  0x25   :  { %585 = vperm.xlu0 %2255, %v481_v37   ;;  %v2143_v45 = vpack.c.bf16 %v54_v43, %v53_v42  ;;  %v484_v46 = vld [vmem:[%s3049_s4 + $0x98] sm:$0xff]  ;;  %v467_v47 = vld [vmem:[%s3049_s4 + $0x10] sm:$0xff]  ;;  %v485_v51 = vld [vmem:[%s3049_s4 + $0xa0] sm:$0xff]  ;;  %vm1451_vm8 = vcmask 1043456   ;;  %vm1441_vm10 = vcmask 490496   ;;  %vm1549_vm11 = vcmask 162816  }
  0x26   :  { %590 = vperm.xlu1 %2256, %v482_v39   ;;  %v468_v48 = vld [vmem:[%s3049_s4 + $0x18] sm:$0xff]  ;;  %v55_v49 = vld [vmem:[%s3045_s0 + $0x70] sm:$0xff]  ;;  %v486_v53 = vld [vmem:[%s3049_s4 + $0xa8] sm:$0xff]  ;;  %s2290_s17 = smov [#allocation3]  }
  0x27   :  { %2136 = vmatpush3.bf16.xpose.msk.msra.mxu0 %vm2365_vm1, %v2131_v31  ;;  %v56_v50 = vld [vmem:[%s3045_s0 + $0x78] sm:$0xff]  ;;  %v469_v54 = vld [vmem:[%s3049_s4 + $0x20] sm:$0xff]  ;;  %v470_v55 = vld [vmem:[%s3049_s4 + $0x28] sm:$0xff]  ;;  %s1639_s18 = sshll.u32 %s2290_s17, 4  ;;  %s1640_s18 = int_to_ptr.vmem [resolvable:$true] %s1639_s18 }
  0x28   :  { %2139 = vmatprep.subr.msk.bf16.mxu0 %vm2365_vm1, %v2137_v38  ;;  %v2149_v52 = vpack.c.bf16 %v56_v50, %v55_v49  ;;  %v487_v56 = vld [vmem:[%s3049_s4 + $0xb0] sm:$0xff]  ;;  %v488_v57 = vld [vmem:[%s3049_s4 + $0xb8] sm:$0xff]  ;;  %v58_v60 = vld [vmem:[%s3046_s1 + $0x8] sm:$0xff]  ;;  %p2266_p1 = scmp.lt.s32.totalorder %s1640_s18, %s1640_s18 }
  0x29   :  { %505 = vperm.xlu0 %2255, %v465_v40   ;;  %v471_v58 = vld [vmem:[%s3049_s4 + $0x30] sm:$0xff]  ;;  %v472_v59 = vld [vmem:[%s3049_s4 + $0x38] sm:$0xff]  ;;  %v489_v61 = vld [vmem:[%s3049_s4 + $0xc0] sm:$0xff] }
  0x2a   :  { %510 = vperm.xlu1 %2256, %v466_v41   ;;  %v59_v62 = vld [vmem:[%s3046_s1 + $0x10] sm:$0xff]  ;;  %v490_v63 = vld [vmem:[%s3049_s4 + $0xc8] sm:$0xff]  ;;  %v60_v0 = vld [vmem:[%s3046_s1 + $0x18] sm:$0xff] }
  0x2b   :  { %v473_v1 = vld [vmem:[%s3049_s4 + $0x40] sm:$0xff]  ;;  %v474_v3 = vld [vmem:[%s3049_s4 + $0x48] sm:$0xff]  ;;  %v491_v5 = vld [vmem:[%s3049_s4 + $0xd0] sm:$0xff] }
  0x2c   :  { %v61_v2 = vld [vmem:[%s3046_s1 + $0x20] sm:$0xff]  ;;  %v62_v4 = vld [vmem:[%s3046_s1 + $0x28] sm:$0xff]  ;;  %v63_v6 = vld [vmem:[%s3046_s1 + $0x30] sm:$0xff] }
  0x2d   :  { %595 = vperm.xlu0 %2255, %v483_v44   ;;  %v492_v7 = vld [vmem:[%s3049_s4 + $0xd8] sm:$0xff]  ;;  %v475_v9 = vld [vmem:[%s3049_s4 + $0x50] sm:$0xff]  ;;  %v65_v10 = vld [vmem:[%s3046_s1 + $0x40] sm:$0xff] }
  0x2e   :  { %600 = vperm.xlu1 %2256, %v484_v46   ;;  %v64_v8 = vld [vmem:[%s3046_s1 + $0x38] sm:$0xff]  ;;  %v66_v12 = vld [vmem:[%s3046_s1 + $0x48] sm:$0xff]  ;;  %v493_v13 = vld [vmem:[%s3049_s4 + $0xe0] sm:$0xff] }
  0x2f   :  { %2142 = vmatpush3.bf16.xpose.msk.msra.mxu0 %vm2365_vm1, %v2137_v38  ;;  %v476_v11 = vld [vmem:[%s3049_s4 + $0x58] sm:$0xff]  ;;  %v67_v14 = vld [vmem:[%s3046_s1 + $0x50] sm:$0xff]  ;;  %v494_v15 = vld [vmem:[%s3049_s4 + $0xe8] sm:$0xff] }
  0x30   :  { %2145 = vmatprep.subr.msk.bf16.mxu0 %vm2365_vm1, %v2143_v45  ;;  %v68_v16 = vld [vmem:[%s3046_s1 + $0x58] sm:$0xff]  ;;  %v477_v17 = vld [vmem:[%s3049_s4 + $0x60] sm:$0xff]  ;;  %v478_v19 = vld [vmem:[%s3049_s4 + $0x68] sm:$0xff] }
  0x31   :  { %515 = vperm.xlu0 %2255, %v467_v47   ;;  %v69_v18 = vld [vmem:[%s3046_s1 + $0x60] sm:$0xff]  ;;  %v70_v20 = vld [vmem:[%s3046_s1 + $0x68] sm:$0xff]  ;;  %v495_v21 = vld [vmem:[%s3049_s4 + $0xf0] sm:$0xff] }
  0x32   :  { %520 = vperm.xlu1 %2256, %v468_v48   ;;  %v71_v22 = vld [vmem:[%s3046_s1 + $0x70] sm:$0xff]  ;;  %v496_v23 = vld [vmem:[%s3049_s4 + $0xf8] sm:$0xff]  ;;  %v497_v27 = vld [vmem:[%s3049_s4 + $0x100] sm:$0xff] }
  0x33   :  { %v72_v24 = vld [vmem:[%s3046_s1 + $0x78] sm:$0x3f]  ;;  %v479_v25 = vld [vmem:[%s3049_s4 + $0x70] sm:$0xff]  ;;  %v498_v28 = vld [vmem:[%s3049_s4 + $0x108] sm:$0xff] }
  0x34   :  { %v480_v26 = vld [vmem:[%s3049_s4 + $0x78] sm:$0xff]  ;;  %v499_v29 = vld [vmem:[%s3049_s4 + $0x110] sm:$0xff]  ;;  %v501_v31 = vld [vmem:[%s3049_s4 + $0x120] sm:$0xff] }
  0x35   :  { %605 = vperm.xlu0 %2255, %v485_v51   ;;  %v500_v30 = vld [vmem:[%s3049_s4 + $0x118] sm:$0xff]  ;;  %v502_v32 = vld [vmem:[%s3049_s4 + $0x128] sm:$0xff]  ;;  %v1129_v33 = vld [vmem:[%s3051_s6] sm:$0xff] }
  0x36   :  { %610 = vperm.xlu1 %2256, %v486_v53   ;;  %v1130_v34 = vld [vmem:[%s3051_s6 + $0x8] sm:$0xff]  ;;  %v1131_v35 = vld [vmem:[%s3051_s6 + $0x10] sm:$0xff]  ;;  %v1132_v36 = vld [vmem:[%s3051_s6 + $0x18] sm:$0xff] }
  0x37   :  { %2148 = vmatpush3.bf16.xpose.msk.msra.mxu0 %vm2365_vm1, %v2143_v45  ;;  %v1133_v37 = vld [vmem:[%s3051_s6 + $0x20] sm:$0xff]  ;;  %v1134_v38 = vld [vmem:[%s3051_s6 + $0x28] sm:$0xff]  ;;  %v1135_v39 = vld [vmem:[%s3051_s6 + $0x30] sm:$0xff] }
  0x38   :  { %2151 = vmatprep.subr.msk.bf16.mxu0 %vm2365_vm1, %v2149_v52  ;;  %v1136_v40 = vld [vmem:[%s3051_s6 + $0x38] sm:$0xf]  ;;  %v1423_v41 = vld [vmem:[%s3053_s8] sm:$0xff]  ;;  %v1424_v42 = vld [vmem:[%s3053_s8 + $0x8] sm:$0xff]  ;;  %s2265_s6 = scalar_lea.vmem %s1640_s18, 32 }
  0x39   :  { %525 = vperm.xlu0 %2255, %v469_v54   ;;  %v1425_v43 = vld [vmem:[%s3053_s8 + $0x10] sm:$0xf]  ;;  %v1539_v44 = vld [vmem:[#allocation2] sm:$0x1]  ;;  %vm2184_vm5 = vmpackc.low %vm808_vm3, %vm2286_vm4 }
  0x3a   :  { %530 = vperm.xlu1 %2256, %v470_v55   ;;  %v427_v45 = vld [vmem:[%s3048_s3] sm:$0xff]  ;;  %vm2244_vm9 = vmpackc.low %vm1451_vm8, %vm2286_vm4 }
  0x3b   :  { %1992 = vmatprep.mubr.msk.f32.mxu1 %vm693_vm2, %v427_v45 }
  0x3d   :  { %615 = vperm.xlu0 %2255, %v487_v56  }
  0x3e   :  { %620 = vperm.xlu1 %2256, %v488_v57  }
  0x3f   :  { %2154 = vmatpush3.bf16.xpose.msk.msra.mxu0 %vm2365_vm1, %v2149_v52 }
  0x41   :  { %535 = vperm.xlu0 %2255, %v471_v58  }
  0x42   :  { %540 = vperm.xlu1 %2256, %v472_v59  }
  0x45   :  { %625 = vperm.xlu0 %2255, %v489_v61  }
  0x46   :  { %1937 = vmatmul.mubr.msk.f32.vlgmr.msra.gmra.mrb[0].mxu0 %vm169_vm0, %v58_v60  ;;  %630 = vperm.xlu1 %2256, %v490_v63  }
  0x47   :  { %1939 = vmatprep.mubr.msk.f32.mxu0 %vm169_vm0, %v59_v62 }
  0x49   :  { %545 = vperm.xlu0 %2255, %v473_v1  }
  0x4a   :  { %1940 = vmatmul.mubr.msk.f32.gmra.mrb[2].mxu0 %vm169_vm0, %v60_v0  ;;  %550 = vperm.xlu1 %2256, %v474_v3  }
  0x4b   :  { %1942 = vmatprep.mubr.msk.f32.mxu0 %vm169_vm0, %v61_v2 }
  0x4d   :  { %635 = vperm.xlu0 %2255, %v491_v5  }
  0x4e   :  { %1943 = vmatmul.mubr.msk.f32.gmra.mrb[4].mxu0 %vm169_vm0, %v62_v4  ;;  %640 = vperm.xlu1 %2256, %v492_v7  }
  0x4f   :  { %1945 = vmatprep.mubr.msk.f32.mxu0 %vm169_vm0, %v63_v6 }
  0x51   :  { %555 = vperm.xlu0 %2255, %v475_v9  }
  0x52   :  { %1946 = vmatmul.mubr.msk.f32.gmra.mrb[6].mxu0 %vm169_vm0, %v64_v8  ;;  %560 = vperm.xlu1 %2256, %v476_v11  }
  0x53   :  { %1948 = vmatprep.mubr.msk.f32.mxu0 %vm169_vm0, %v65_v10 }
  0x55   :  { %645 = vperm.xlu0 %2255, %v493_v13  }
  0x56   :  { %1949 = vmatmul.mubr.msk.f32.gmra.mrb[8].mxu0 %vm169_vm0, %v66_v12  ;;  %650 = vperm.xlu1 %2256, %v494_v15  }
  0x57   :  { %1951 = vmatprep.mubr.msk.f32.mxu0 %vm169_vm0, %v67_v14 }
  0x59   :  { %565 = vperm.xlu0 %2255, %v477_v17  }
  0x5a   :  { %1952 = vmatmul.mubr.msk.f32.gmra.mrb[10].mxu0 %vm169_vm0, %v68_v16  ;;  %570 = vperm.xlu1 %2256, %v478_v19  }
  0x5b   :  { %1954 = vmatprep.mubr.msk.f32.mxu0 %vm169_vm0, %v69_v18 }
  0x5d   :  { %655 = vperm.xlu0 %2255, %v495_v21  }
  0x5e   :  { %1955 = vmatmul.mubr.msk.f32.gmra.mrb[12].mxu0 %vm169_vm0, %v70_v20  ;;  %660 = vperm.xlu1 %2256, %v496_v23  }
  0x5f   :  { %1957 = vmatprep.mubr.msk.f32.mxu0 %vm169_vm0, %v71_v22 }
  0x61   :  { %575 = vperm.xlu0 %2255, %v479_v25  }
  0x62   :  { %1958 = vmatmul.mubr.msk.f32.gmra.mrb[14].mxu0 %vm169_vm0, %v72_v24  ;;  %580 = vperm.xlu1 %2256, %v480_v26  }
  0x65   :  { %665 = vperm.xlu0 %2255, %v497_v27  }
  0x66   :  { %670 = vperm.xlu1 %2256, %v498_v28  }
  0x69   :  { %675 = vperm.xlu0 %2255, %v499_v29  }
  0x6a   :  { %680 = vperm.xlu1 %2256, %v500_v30  }
  0x6d   :  { %685 = vperm.xlu0 %2255, %v501_v31  }
  0x6e   :  { %690 = vperm.xlu1 %2256, %v502_v32  }
  0x71   :  { %1139 = vperm.xlu0 %2255, %v1129_v33  }
  0x72   :  { %1144 = vperm.xlu1 %2256, %v1130_v34  }
  0x75   :  { %1149 = vperm.xlu0 %2255, %v1131_v35  }
  0x76   :  { %1154 = vperm.xlu1 %2256, %v1132_v36  }
  0x79   :  { %1159 = vperm.xlu0 %2255, %v1133_v37  }
  0x7a   :  { %1164 = vperm.xlu1 %2256, %v1134_v38  }
  0x7d   :  { %1169 = vperm.xlu0 %2255, %v1135_v39  }
  0x7e   :  { %1174 = vperm.xlu1 %2256, %v1136_v40  }
  0x81   :  { %1428 = vperm.xlu0 %2255, %v1423_v41  }
  0x82   :  { %1433 = vperm.xlu1 %2256, %v1424_v42  }
  0x84   :  { %v92_v47 = vpop.permute.xlu0 %91 }
  0x85   :  { %1438 = vperm.xlu0 %2255, %v1425_v43   ;;  %v102_v46 = vpop.permute.xlu1 %101 }
  0x86   :  { %1542 = vperm.xlu1 %2256, %v1539_v44  }
  0x88   :  { %v97_v49 = vpop.permute.xlu0 %96 }
  0x89   :  { %v107_v48 = vpop.permute.xlu1 %106 }
  0x8c   :  { %v112_v51 = vpop.permute.xlu0 %111 }
  0x8d   :  { %v117_v50 = vpop.permute.xlu1 %116 }
  0x90   :  { %v122_v60 = vpop.permute.xlu0 %121 }
  0x91   :  { %v127_v57 = vpop.permute.xlu1 %126 }
  0x94   :  { %v132_v9 = vpop.permute.xlu0 %131 }
  0x95   :  { %v137_v6 = vpop.permute.xlu1 %136 }
  0x98   :  { %v142_v21 = vpop.permute.xlu0 %141 }
  0x99   :  { %v147_v18 = vpop.permute.xlu1 %146 }
  0x9c   :  { %v152_v34 = vpop.permute.xlu0 %151 }
  0x9d   :  { %v157_v31 = vpop.permute.xlu1 %156 }
  0xa1   :  { %v167_v43 = vpop.permute.xlu1 %166 }
 0x119   :  { %v1938_v52 = vpop.f32.mrb[0].mxu0 }
 0x11a   :  { %v338_v53 = vadd.f32 %v1938_v52, %v97_v49  ;;  %v332_v54 = vpop.f32.mrb[1].mxu0 }
 0x11b   :  { %v333_v55 = vadd.f32 %v332_v54, %v92_v47  ;;  %v428_v54 = vld [vmem:[%s3048_s3 + $0x8] sm:$0xff] }
 0x11c   :  { %v412_v56 = vmax.f32 %v338_v53, 0.0 }
 0x11d   :  { %v411_v58 = vmax.f32 %v333_v55, 0.0  ;;  %v1941_v59 = vpop.f32.mrb[2].mxu0  ;;  %v429_v55 = vld [vmem:[%s3048_s3 + $0x10] sm:$0xff] }
 0x11e   :  { %v348_v61 = vadd.f32 %v1941_v59, %v107_v48  ;;  %v342_v62 = vpop.f32.mrb[3].mxu0  ;;  %v433_v59 = vld [vmem:[%s3048_s3 + $0x30] sm:$0xff] }
 0x11f   :  { %v343_v63 = vadd.f32 %v342_v62, %v102_v46  ;;  %v2155_v0 = vpack.c.bf16 %v412_v56, %v411_v58  ;;  %v162_v46 = vpop.permute.xlu0 %161  ;;  %v430_v56 = vld [vmem:[%s3048_s3 + $0x18] sm:$0xff]  ;;  %v432_v58 = vld [vmem:[%s3048_s3 + $0x28] sm:$0xff] }
 0x120   :  { %v414_v1 = vmax.f32 %v348_v61, 0.0  ;;  %v435_v61 = vld [vmem:[%s3048_s3 + $0x40] sm:$0xff]  ;;  %v436_v62 = vld [vmem:[%s3048_s3 + $0x48] sm:$0xff] }
 0x121   :  { %v413_v2 = vmax.f32 %v343_v63, 0.0  ;;  %v1944_v3 = vpop.f32.mrb[4].mxu0  ;;  %2156 = vmatprep.subr.bf16.mxu1 %v2155_v0  ;;  %v437_v63 = vld [vmem:[%s3048_s3 + $0x50] sm:$0xff] }
 0x122   :  { %v358_v4 = vadd.f32 %v1944_v3, %v117_v50  ;;  %v352_v5 = vpop.f32.mrb[5].mxu0  ;;  %2158 = vmatpush3.bf16.msra.mxu1 %v2155_v0  ;;  %v438_v0 = vld [vmem:[%s3048_s3 + $0x58] sm:$0xff]  ;;  %v441_v3 = vld [vmem:[%s3048_s3 + $0x70] sm:$0xff] }
 0x123   :  { %v2159_v7 = vpack.c.bf16 %v414_v1, %v413_v2  ;;  %v353_v8 = vadd.f32 %v352_v5, %v112_v51  ;;  %v439_v1 = vld [vmem:[%s3048_s3 + $0x60] sm:$0xff]  ;;  %v440_v2 = vld [vmem:[%s3048_s3 + $0x68] sm:$0xff] }
 0x124   :  { %v416_v10 = vmax.f32 %v358_v4, 0.0  ;;  %v442_v4 = vld [vmem:[%s3048_s3 + $0x78] sm:$0xff]  ;;  %v443_v5 = vld [vmem:[%s3048_s3 + $0x80] sm:$0xff] }
 0x125   :  { %v415_v11 = vmax.f32 %v353_v8, 0.0  ;;  %v1947_v12 = vpop.f32.mrb[6].mxu0  ;;  %2160 = vmatprep.subr.bf16.mxu1 %v2159_v7  ;;  %v446_v8 = vld [vmem:[%s3048_s3 + $0x98] sm:$0xff] }
 0x126   :  { %v368_v13 = vadd.f32 %v1947_v12, %v127_v57  ;;  %v362_v14 = vpop.f32.mrb[7].mxu0  ;;  %2162 = vmatpush3.bf16.msra.mxu1 %v2159_v7  ;;  %v431_v57 = vld [vmem:[%s3048_s3 + $0x20] sm:$0xff]  ;;  %v445_v7 = vld [vmem:[%s3048_s3 + $0x90] sm:$0xff]  ;;  %v450_v12 = vld [vmem:[%s3048_s3 + $0xb8] sm:$0xff] }
 0x127   :  { %v2163_v15 = vpack.c.bf16 %v416_v10, %v415_v11  ;;  %v363_v16 = vadd.f32 %v362_v14, %v122_v60  ;;  %v434_v60 = vld [vmem:[%s3048_s3 + $0x38] sm:$0xff]  ;;  %v448_v10 = vld [vmem:[%s3048_s3 + $0xa8] sm:$0xff]  ;;  %v449_v11 = vld [vmem:[%s3048_s3 + $0xb0] sm:$0xff] }
 0x128   :  { %v418_v17 = vmax.f32 %v368_v13, 0.0  ;;  %v451_v13 = vld [vmem:[%s3048_s3 + $0xc0] sm:$0xff]  ;;  %v452_v14 = vld [vmem:[%s3048_s3 + $0xc8] sm:$0xff] }
 0x129   :  { %v417_v19 = vmax.f32 %v363_v16, 0.0  ;;  %v1950_v20 = vpop.f32.mrb[8].mxu0  ;;  %2164 = vmatprep.subr.bf16.mxu1 %v2163_v15  ;;  %v454_v16 = vld [vmem:[%s3048_s3 + $0xd8] sm:$0xff] }
 0x12a   :  { %v378_v22 = vadd.f32 %v1950_v20, %v137_v6  ;;  %v372_v23 = vpop.f32.mrb[9].mxu0  ;;  %2166 = vmatpush3.bf16.msra.mxu1 %v2163_v15  ;;  %v444_v6 = vld [vmem:[%s3048_s3 + $0x88] sm:$0xff]  ;;  %v453_v15 = vld [vmem:[%s3048_s3 + $0xd0] sm:$0xff]  ;;  %v458_v20 = vld [vmem:[%s3048_s3 + $0xf8] sm:$0xff] }
 0x12b   :  { %v2167_v24 = vpack.c.bf16 %v418_v17, %v417_v19  ;;  %v373_v25 = vadd.f32 %v372_v23, %v132_v9  ;;  %v447_v9 = vld [vmem:[%s3048_s3 + $0xa0] sm:$0xff]  ;;  %v457_v19 = vld [vmem:[%s3048_s3 + $0xf0] sm:$0xff] }
 0x12c   :  { %v420_v26 = vmax.f32 %v378_v22, 0.0  ;;  %v455_v17 = vld [vmem:[%s3048_s3 + $0xe0] sm:$0xff]  ;;  %v460_v22 = vld [vmem:[%s3048_s3 + $0x108] sm:$0xff]  ;;  %v461_v23 = vld [vmem:[%s3048_s3 + $0x110] sm:$0xff] }
 0x12d   :  { %v419_v27 = vmax.f32 %v373_v25, 0.0  ;;  %v1953_v28 = vpop.f32.mrb[10].mxu0  ;;  %2168 = vmatprep.subr.bf16.mxu1 %v2167_v24  ;;  %v463_v25 = vld [vmem:[%s3048_s3 + $0x120] sm:$0xff] }
 0x12e   :  { %v388_v29 = vadd.f32 %v1953_v28, %v147_v18  ;;  %v382_v30 = vpop.f32.mrb[11].mxu0  ;;  %2170 = vmatpush3.bf16.msra.mxu1 %v2167_v24  ;;  %v456_v18 = vld [vmem:[%s3048_s3 + $0xe8] sm:$0xff]  ;;  %v462_v24 = vld [vmem:[%s3048_s3 + $0x118] sm:$0xff]  ;;  %v2854_v28 = vpop.permute.xlu0 %585 }
 0x12f   :  { %v2171_v32 = vpack.c.bf16 %v420_v26, %v419_v27  ;;  %v383_v33 = vadd.f32 %v382_v30, %v142_v21  ;;  %v459_v21 = vld [vmem:[%s3048_s3 + $0x100] sm:$0xff]  ;;  %v464_v26 = vld [vmem:[%s3048_s3 + $0x128] sm:$0xff]  ;;  %v2852_v27 = vpop.permute.xlu1 %590 }
 0x130   :  { %v422_v35 = vmax.f32 %v388_v29, 0.0  ;;  %v1106_v29 = vld [vmem:[%s3050_s5 + $0x8] sm:$0xff] }
 0x131   :  { %v421_v36 = vmax.f32 %v383_v33, 0.0  ;;  %v1956_v37 = vpop.f32.mrb[12].mxu0  ;;  %2172 = vmatprep.subr.bf16.mxu1 %v2171_v32  ;;  %1266 = vmatprep.mubr.f32.mxu0 %v1106_v29 }
 0x132   :  { %v398_v38 = vadd.f32 %v1956_v37, %v157_v31  ;;  %v392_v39 = vpop.f32.mrb[13].mxu0  ;;  %2174 = vmatpush3.bf16.msra.mxu1 %v2171_v32  ;;  %v506_v31 = vpop.permute.xlu0 %505 }
 0x133   :  { %v2175_v40 = vpack.c.bf16 %v422_v35, %v421_v36  ;;  %v393_v41 = vadd.f32 %v392_v39, %v152_v34  ;;  %v511_v30 = vpop.permute.xlu1 %510  ;;  %v1107_v34 = vld [vmem:[%s3050_s5 + $0x10] sm:$0xff] }
 0x134   :  { %v424_v42 = vmax.f32 %v398_v38, 0.0 }
 0x135   :  { %v423_v44 = vmax.f32 %v393_v41, 0.0  ;;  %v1959_v45 = vpop.f32.mrb[14].mxu0  ;;  %2176 = vmatprep.subr.bf16.mxu1 %v2175_v40 }
 0x136   :  { %v408_v47 = vadd.f32 %v1959_v45, %v167_v43  ;;  %v402_v48 = vpop.f32.mrb[15].mxu0  ;;  %2178 = vmatpush3.bf16.msra.mxu1 %v2175_v40  ;;  %v2861_v33 = vpop.permute.xlu0 %595 }
 0x137   :  { %v2179_v49 = vpack.c.bf16 %v424_v42, %v423_v44  ;;  %v403_v50 = vadd.f32 %v402_v48, %v162_v46  ;;  %v2859_v32 = vpop.permute.xlu1 %600 }
 0x138   :  { %v426_v51 = vmax.f32 %v408_v47, 0.0 }
 0x139   :  { %v425_v52 = vmax.f32 %v403_v50, 0.0  ;;  %2180 = vmatprep.subr.bf16.mxu1 %v2179_v49 }
 0x13a   :  { %2182 = vmatpush3.bf16.msra.mxu1 %v2179_v49  ;;  %v516_v36 = vpop.permute.xlu0 %515 }
 0x13b   :  { %v2183_v53 = vpack.c.bf16 %v426_v51, %v425_v52  ;;  %v521_v35 = vpop.permute.xlu1 %520 }
 0x13d   :  { %2185 = vmatprep.subr.msk.bf16.mxu1 %vm2184_vm5, %v2183_v53 }
 0x13e   :  { %2188 = vmatpush3.bf16.msk.msra.mxu1 %vm2184_vm5, %v2183_v53  ;;  %v2869_v38 = vpop.permute.xlu0 %605 }
 0x13f   :  { %v2867_v37 = vpop.permute.xlu1 %610 }
 0x141   :  { %1993 = vmatmul.mubr.msk.f32.vlgmr.msra.gmra.mrb[0].mxu1 %vm693_vm2, %v428_v54 }
 0x142   :  { %1995 = vmatprep.mubr.msk.f32.mxu1 %vm693_vm2, %v429_v55  ;;  %v526_v40 = vpop.permute.xlu0 %525 }
 0x143   :  { %v531_v39 = vpop.permute.xlu1 %530 }
 0x145   :  { %1996 = vmatmul.mubr.msk.f32.gmra.mrb[2].mxu1 %vm693_vm2, %v430_v56 }
 0x146   :  { %1998 = vmatprep.mubr.msk.f32.mxu1 %vm693_vm2, %v431_v57  ;;  %v2873_v42 = vpop.permute.xlu0 %615 }
 0x147   :  { %v2871_v41 = vpop.permute.xlu1 %620 }
 0x149   :  { %1999 = vmatmul.mubr.msk.f32.gmra.mrb[4].mxu1 %vm693_vm2, %v432_v58 }
 0x14a   :  { %2001 = vmatprep.mubr.msk.f32.mxu1 %vm693_vm2, %v433_v59  ;;  %v536_v44 = vpop.permute.xlu0 %535 }
 0x14b   :  { %v541_v43 = vpop.permute.xlu1 %540 }
 0x14d   :  { %2002 = vmatmul.mubr.msk.f32.gmra.mrb[6].mxu1 %vm693_vm2, %v434_v60 }
 0x14e   :  { %2004 = vmatprep.mubr.msk.f32.mxu1 %vm693_vm2, %v435_v61  ;;  %v2877_v46 = vpop.permute.xlu0 %625 }
 0x14f   :  { %v2875_v45 = vpop.permute.xlu1 %630 }
 0x151   :  { %2005 = vmatmul.mubr.msk.f32.gmra.mrb[8].mxu1 %vm693_vm2, %v436_v62 }
 0x152   :  { %2007 = vmatprep.mubr.msk.f32.mxu1 %vm693_vm2, %v437_v63  ;;  %v546_v48 = vpop.permute.xlu0 %545 }
 0x153   :  { %v551_v47 = vpop.permute.xlu1 %550 }
 0x155   :  { %2008 = vmatmul.mubr.msk.f32.gmra.mrb[10].mxu1 %vm693_vm2, %v438_v0 }
 0x156   :  { %2010 = vmatprep.mubr.msk.f32.mxu1 %vm693_vm2, %v439_v1  ;;  %v2881_v50 = vpop.permute.xlu0 %635 }
 0x157   :  { %v2879_v49 = vpop.permute.xlu1 %640 }
 0x159   :  { %2011 = vmatmul.mubr.msk.f32.gmra.mrb[12].mxu1 %vm693_vm2, %v440_v2 }
 0x15a   :  { %2013 = vmatprep.mubr.msk.f32.mxu1 %vm693_vm2, %v441_v3  ;;  %v556_v59 = vpop.permute.xlu0 %555 }
 0x15b   :  { %v561_v56 = vpop.permute.xlu1 %560 }
 0x15d   :  { %2014 = vmatmul.mubr.msk.f32.gmra.mrb[14].mxu1 %vm693_vm2, %v442_v4 }
 0x15e   :  { %2016 = vmatprep.mubr.msk.f32.mxu1 %vm693_vm2, %v443_v5 }
 0x15f   :  { %v2885_v5 = vpop.permute.xlu1 %650 }
 0x161   :  { %2017 = vmatmul.mubr.msk.f32.gmra.mrb[16].mxu1 %vm693_vm2, %v444_v6 }
 0x162   :  { %2019 = vmatprep.mubr.msk.f32.mxu1 %vm693_vm2, %v445_v7 }
 0x165   :  { %2020 = vmatmul.mubr.msk.f32.gmra.mrb[18].mxu1 %vm693_vm2, %v446_v8  ;;  %v2889_v8 = vpop.permute.xlu0 %645 }
 0x166   :  { %2022 = vmatprep.mubr.msk.f32.mxu1 %vm693_vm2, %v447_v9 }
 0x169   :  { %2023 = vmatmul.mubr.msk.f32.gmra.mrb[20].mxu1 %vm693_vm2, %v448_v10 }
 0x16a   :  { %2025 = vmatprep.mubr.msk.f32.mxu1 %vm693_vm2, %v449_v11 }
 0x16d   :  { %2026 = vmatmul.mubr.msk.f32.gmra.mrb[22].mxu1 %vm693_vm2, %v450_v12 }
 0x16e   :  { %2028 = vmatprep.mubr.msk.f32.mxu1 %vm693_vm2, %v451_v13 }
 0x171   :  { %2029 = vmatmul.mubr.msk.f32.gmra.mrb[24].mxu1 %vm693_vm2, %v452_v14 }
 0x172   :  { %2031 = vmatprep.mubr.msk.f32.mxu1 %vm693_vm2, %v453_v15 }
 0x175   :  { %2032 = vmatmul.mubr.msk.f32.gmra.mrb[26].mxu1 %vm693_vm2, %v454_v16 }
 0x176   :  { %2034 = vmatprep.mubr.msk.f32.mxu1 %vm693_vm2, %v455_v17  ;;  %v571_v17 = vpop.permute.xlu1 %570 }
 0x179   :  { %2035 = vmatmul.mubr.msk.f32.gmra.mrb[28].mxu1 %vm693_vm2, %v456_v18 }
 0x17a   :  { %2037 = vmatprep.mubr.msk.f32.mxu1 %vm693_vm2, %v457_v19 }
 0x17d   :  { %2038 = vmatmul.mubr.msk.f32.gmra.mrb[30].mxu1 %vm693_vm2, %v458_v20  ;;  %v566_v20 = vpop.permute.xlu0 %565 }
 0x17e   :  { %2040 = vmatprep.mubr.msk.f32.mxu1 %vm693_vm2, %v459_v21 }
 0x181   :  { %2041 = vmatmul.mubr.msk.f32.gmra.mrb[32].mxu1 %vm693_vm2, %v460_v22 }
 0x182   :  { %2043 = vmatprep.mubr.msk.f32.mxu1 %vm693_vm2, %v461_v23 }
 0x185   :  { %2044 = vmatmul.mubr.msk.f32.gmra.mrb[34].mxu1 %vm693_vm2, %v462_v24 }
 0x186   :  { %2046 = vmatprep.mubr.msk.f32.mxu1 %vm693_vm2, %v463_v25 }
 0x189   :  { %2047 = vmatmul.mubr.msk.f32.gmra.mrb[36].mxu1 %vm693_vm2, %v464_v26 }
 0x18a   :  { %2061 = vmatprep.mubr.msk.f32.mxu1 %vm1177_vm6, %v1107_v34  ;;  %v2895_v34 = vpop.permute.xlu1 %660 }
 0x214   :  { %v1994_v51 = vpop.f32.mrb[0].mxu1 }
 0x215   :  { %v884_v52 = vadd.f32 %v1994_v51, %v511_v30  ;;  %v878_v53 = vpop.f32.mrb[1].mxu1 }
 0x216   :  { %v879_v54 = vadd.f32 %v878_v53, %v506_v31 }
 0x217   :  { %v1068_v55 = vmax.f32 %v884_v52, 0.0 }
 0x218   :  { %v1067_v57 = vmax.f32 %v879_v54, 0.0  ;;  %v1997_v58 = vpop.f32.mrb[2].mxu1  ;;  %v581_v54 = vpop.permute.xlu1 %580 }
 0x219   :  { %v894_v60 = vadd.f32 %v1997_v58, %v521_v35  ;;  %v888_v61 = vpop.f32.mrb[3].mxu1 }
 0x21a   :  { %v2883_v62 = vpack.c.bf16 %v1068_v55, %v1067_v57  ;;  %v889_v63 = vadd.f32 %v888_v61, %v516_v36 }
 0x21b   :  { %v1070_v0 = vmax.f32 %v894_v60, 0.0 }
 0x21c   :  { %v1069_v1 = vmax.f32 %v889_v63, 0.0  ;;  %v2000_v2 = vpop.f32.mrb[4].mxu1 }
 0x21d   :  { %v904_v3 = vadd.f32 %v2000_v2, %v531_v39  ;;  %v898_v4 = vpop.f32.mrb[5].mxu1  ;;  %v2899_v39 = vpop.permute.xlu0 %655 }
 0x21e   :  { %v2887_v6 = vpack.c.bf16 %v1070_v0, %v1069_v1  ;;  %v899_v7 = vadd.f32 %v898_v4, %v526_v40 }
 0x21f   :  { %v1072_v9 = vmax.f32 %v904_v3, 0.0 }
 0x220   :  { %v1071_v10 = vmax.f32 %v899_v7, 0.0  ;;  %v2003_v11 = vpop.f32.mrb[6].mxu1 }
 0x221   :  { %v914_v12 = vadd.f32 %v2003_v11, %v541_v43  ;;  %v908_v13 = vpop.f32.mrb[7].mxu1  ;;  %v576_v57 = vpop.permute.xlu0 %575 }
 0x222   :  { %v2891_v14 = vpack.c.bf16 %v1072_v9, %v1071_v10  ;;  %v909_v15 = vadd.f32 %v908_v13, %v536_v44 }
 0x223   :  { %v1074_v16 = vmax.f32 %v914_v12, 0.0 }
 0x224   :  { %v1073_v18 = vmax.f32 %v909_v15, 0.0  ;;  %v2006_v19 = vpop.f32.mrb[8].mxu1 }
 0x225   :  { %v924_v21 = vadd.f32 %v2006_v19, %v551_v47  ;;  %v918_v22 = vpop.f32.mrb[9].mxu1 }
 0x226   :  { %v2893_v23 = vpack.c.bf16 %v1074_v16, %v1073_v18  ;;  %v919_v24 = vadd.f32 %v918_v22, %v546_v48 }
 0x227   :  { %v1076_v25 = vmax.f32 %v924_v21, 0.0 }
 0x228   :  { %v1075_v26 = vmax.f32 %v919_v24, 0.0  ;;  %v2009_v29 = vpop.f32.mrb[10].mxu1 }
 0x229   :  { %v934_v30 = vadd.f32 %v2009_v29, %v561_v56  ;;  %v928_v31 = vpop.f32.mrb[11].mxu1 }
 0x22a   :  { %v2897_v35 = vpack.c.bf16 %v1076_v25, %v1075_v26  ;;  %v929_v36 = vadd.f32 %v928_v31, %v556_v59 }
 0x22b   :  { %v1078_v40 = vmax.f32 %v934_v30, 0.0 }
 0x22c   :  { %v1077_v43 = vmax.f32 %v929_v36, 0.0  ;;  %v2012_v44 = vpop.f32.mrb[12].mxu1 }
 0x22d   :  { %v944_v47 = vadd.f32 %v2012_v44, %v571_v17  ;;  %v938_v51 = vpop.f32.mrb[13].mxu1 }
 0x22e   :  { %v2901_v52 = vpack.c.bf16 %v1078_v40, %v1077_v43  ;;  %v939_v48 = vadd.f32 %v938_v51, %v566_v20 }
 0x22f   :  { %v1080_v53 = vmax.f32 %v944_v47, 0.0 }
 0x230   :  { %v1079_v55 = vmax.f32 %v939_v48, 0.0  ;;  %v2015_v56 = vpop.f32.mrb[14].mxu1 }
 0x231   :  { %v954_v58 = vadd.f32 %v2015_v56, %v581_v54  ;;  %v948_v60 = vpop.f32.mrb[15].mxu1 }
 0x232   :  { %v2903_v61 = vpack.c.bf16 %v1080_v53, %v1079_v55  ;;  %v949_v59 = vadd.f32 %v948_v60, %v576_v57 }
 0x233   :  { %v1082_v63 = vmax.f32 %v954_v58, 0.0 }
 0x234   :  { %v1081_v0 = vmax.f32 %v949_v59, 0.0  ;;  %v2018_v1 = vpop.f32.mrb[16].mxu1 }
 0x235   :  { %v964_v2 = vadd.f32 %v2018_v1, %v2852_v27  ;;  %v958_v3 = vpop.f32.mrb[17].mxu1 }
 0x236   :  { %v2906_v4 = vpack.c.bf16 %v1082_v63, %v1081_v0  ;;  %v959_v7 = vadd.f32 %v958_v3, %v2854_v28 }
 0x237   :  { %v1084_v9 = vmax.f32 %v964_v2, 0.0 }
 0x238   :  { %v1083_v10 = vmax.f32 %v959_v7, 0.0  ;;  %v2021_v11 = vpop.f32.mrb[18].mxu1 }
 0x239   :  { %v974_v12 = vadd.f32 %v2021_v11, %v2859_v32  ;;  %v968_v13 = vpop.f32.mrb[19].mxu1 }
 0x23a   :  { %v2189_v15 = vpack.c.bf16 %v1084_v9, %v1083_v10  ;;  %v969_v16 = vadd.f32 %v968_v13, %v2861_v33 }
 0x23b   :  { %v1086_v17 = vmax.f32 %v974_v12, 0.0 }
 0x23c   :  { %v1085_v18 = vmax.f32 %v969_v16, 0.0  ;;  %v2024_v19 = vpop.f32.mrb[20].mxu1  ;;  %2190 = vmatprep.subr.bf16.mxu0 %v2189_v15 }
 0x23d   :  { %v984_v27 = vadd.f32 %v2024_v19, %v2867_v37  ;;  %v978_v20 = vpop.f32.mrb[21].mxu1  ;;  %2192 = vmatpush3.bf16.msra.mxu0 %v2883_v62 }
 0x23e   :  { %v2193_v21 = vpack.c.bf16 %v1086_v17, %v1085_v18  ;;  %v979_v28 = vadd.f32 %v978_v20, %v2869_v38 }
 0x23f   :  { %v1088_v22 = vmax.f32 %v984_v27, 0.0 }
 0x240   :  { %v1087_v24 = vmax.f32 %v979_v28, 0.0  ;;  %v2027_v25 = vpop.f32.mrb[22].mxu1  ;;  %2194 = vmatprep.subr.bf16.mxu0 %v2193_v21 }
 0x241   :  { %v994_v32 = vadd.f32 %v2027_v25, %v2871_v41  ;;  %v988_v26 = vpop.f32.mrb[23].mxu1  ;;  %2196 = vmatpush3.bf16.msra.mxu0 %v2887_v6 }
 0x242   :  { %v2197_v33 = vpack.c.bf16 %v1088_v22, %v1087_v24  ;;  %v989_v29 = vadd.f32 %v988_v26, %v2873_v42  ;;  %v1112_v24 = vld [vmem:[%s3050_s5 + $0x38] sm:$0xff]  ;;  %v1111_v26 = vld [vmem:[%s3050_s5 + $0x30] sm:$0xff] }
 0x243   :  { %v1090_v30 = vmax.f32 %v994_v32, 0.0 }
 0x244   :  { %v1089_v37 = vmax.f32 %v989_v29, 0.0  ;;  %v2030_v31 = vpop.f32.mrb[24].mxu1  ;;  %2198 = vmatprep.subr.bf16.mxu0 %v2197_v33  ;;  %v1115_v29 = vld [vmem:[%s3050_s5 + $0x50] sm:$0xff] }
 0x245   :  { %v1004_v62 = vadd.f32 %v2030_v31, %v2875_v45  ;;  %v998_v36 = vpop.f32.mrb[25].mxu1  ;;  %2200 = vmatpush3.bf16.msra.mxu0 %v2891_v14  ;;  %v1118_v31 = vld [vmem:[%s3050_s5 + $0x68] sm:$0xff] }
 0x246   :  { %v2201_v38 = vpack.c.bf16 %v1090_v30, %v1089_v37  ;;  %v999_v40 = vadd.f32 %v998_v36, %v2877_v46  ;;  %v1114_v30 = vld [vmem:[%s3050_s5 + $0x48] sm:$0xff]  ;;  %v1117_v36 = vld [vmem:[%s3050_s5 + $0x60] sm:$0xff] }
 0x247   :  { %v1092_v43 = vmax.f32 %v1004_v62, 0.0  ;;  %v1110_v37 = vld [vmem:[%s3050_s5 + $0x28] sm:$0xff]  ;;  %v1113_v62 = vld [vmem:[%s3050_s5 + $0x40] sm:$0xff] }
 0x248   :  { %v1091_v41 = vmax.f32 %v999_v40, 0.0  ;;  %v2033_v44 = vpop.f32.mrb[26].mxu1  ;;  %2202 = vmatprep.subr.bf16.mxu0 %v2201_v38  ;;  %v1116_v38 = vld [vmem:[%s3050_s5 + $0x58] sm:$0xff]  ;;  %v1121_v40 = vld [vmem:[%s3050_s5 + $0x80] sm:$0xff] }
 0x249   :  { %v1014_v6 = vadd.f32 %v2033_v44, %v2879_v49  ;;  %v1008_v47 = vpop.f32.mrb[27].mxu1  ;;  %2204 = vmatpush3.bf16.msra.mxu0 %v2893_v23  ;;  %v671_v49 = vpop.permute.xlu1 %670  ;;  %v1122_v44 = vld [vmem:[%s3050_s5 + $0x88] sm:$0xff] }
 0x24a   :  { %v2205_v42 = vpack.c.bf16 %v1092_v43, %v1091_v41  ;;  %v1009_v51 = vadd.f32 %v1008_v47, %v2881_v50  ;;  %v666_v23 = vpop.permute.xlu0 %665  ;;  %v1119_v43 = vld [vmem:[%s3050_s5 + $0x70] sm:$0xff]  ;;  %v1120_v41 = vld [vmem:[%s3050_s5 + $0x78] sm:$0xff]  ;;  %v1125_v47 = vld [vmem:[%s3050_s5 + $0xa0] sm:$0xff] }
 0x24b   :  { %v1094_v48 = vmax.f32 %v1014_v6, 0.0  ;;  %v1124_v6 = vld [vmem:[%s3050_s5 + $0x98] sm:$0xff] }
 0x24c   :  { %v1093_v45 = vmax.f32 %v1009_v51, 0.0  ;;  %v2036_v53 = vpop.f32.mrb[28].mxu1  ;;  %2206 = vmatprep.subr.bf16.mxu0 %v2205_v42  ;;  %v1123_v42 = vld [vmem:[%s3050_s5 + $0x90] sm:$0xff]  ;;  %v1128_v51 = vld [vmem:[%s3050_s5 + $0xb8] sm:$0xf] }
 0x24d   :  { %v1024_v14 = vadd.f32 %v2036_v53, %v2885_v5  ;;  %v1018_v54 = vpop.f32.mrb[29].mxu1  ;;  %2208 = vmatpush3.bf16.msra.mxu0 %v2897_v35  ;;  %v681_v2 = vpop.permute.xlu1 %680  ;;  %v2287_v53 = vmov 0.0|0.0  }
 0x24e   :  { %v2209_v46 = vpack.c.bf16 %v1094_v48, %v1093_v45  ;;  %v1019_v55 = vadd.f32 %v1018_v54, %v2889_v8  ;;  %v676_v9 = vpop.permute.xlu0 %675  ;;  %v1127_v48 = vld [vmem:[%s3050_s5 + $0xb0] sm:$0xf]  ;;  %v1126_v45 = vld [vmem:[%s3050_s5 + $0xa8] sm:$0xf] }
 0x24f   :  { %v1096_v56 = vmax.f32 %v1024_v14, 0.0  ;;  %v2289_v14 = vmov 0.0  }
 0x250   :  { %v1095_v57 = vmax.f32 %v1019_v55, 0.0  ;;  %v2039_v58 = vpop.f32.mrb[30].mxu1  ;;  %2210 = vmatprep.subr.bf16.mxu0 %v2209_v46 }
 0x251   :  { %v1034_v50 = vadd.f32 %v2039_v58, %v2895_v34  ;;  %v1028_v60 = vpop.f32.mrb[31].mxu1  ;;  %2212 = vmatpush3.bf16.msra.mxu0 %v2901_v52  ;;  %v691_v17 = vpop.permute.xlu1 %690 }
 0x252   :  { %v2213_v59 = vpack.c.bf16 %v1096_v56, %v1095_v57  ;;  %v1029_v5 = vadd.f32 %v1028_v60, %v2899_v39  ;;  %v1105_v39 = vld [vmem:[%s3050_s5] sm:$0xff]  ;;  %v686_v27 = vpop.permute.xlu0 %685 }
 0x253   :  { %v1098_v63 = vmax.f32 %v1034_v50, 0.0 }
 0x254   :  { %v1097_v0 = vmax.f32 %v1029_v5, 0.0  ;;  %v2042_v35 = vpop.f32.mrb[32].mxu1  ;;  %2214 = vmatprep.subr.bf16.mxu0 %v2213_v59 }
 0x255   :  { %v1044_v1 = vadd.f32 %v2042_v35, %v671_v49  ;;  %v1038_v8 = vpop.f32.mrb[33].mxu1  ;;  %2216 = vmatpush3.bf16.msra.mxu0 %v2903_v61  ;;  %v1109_v61 = vld [vmem:[%s3050_s5 + $0x20] sm:$0xff]  ;;  %v1145_v50 = vpop.permute.xlu1 %1144 }
 0x256   :  { %v2217_v3 = vpack.c.bf16 %v1098_v63, %v1097_v0  ;;  %v1039_v7 = vadd.f32 %v1038_v8, %v666_v23  ;;  %v1140_v49 = vpop.permute.xlu0 %1139 }
 0x257   :  { %v1100_v10 = vmax.f32 %v1044_v1, 0.0 }
 0x258   :  { %v1099_v34 = vmax.f32 %v1039_v7, 0.0  ;;  %v2045_v11 = vpop.f32.mrb[34].mxu1  ;;  %2218 = vmatprep.subr.bf16.mxu0 %v2217_v3 }
 0x259   :  { %v1054_v52 = vadd.f32 %v2045_v11, %v681_v2  ;;  %v1048_v12 = vpop.f32.mrb[35].mxu1  ;;  %2220 = vmatpush3.bf16.msra.mxu0 %v2906_v4  ;;  %v1108_v4 = vld [vmem:[%s3050_s5 + $0x18] sm:$0xff] }
 0x25a   :  { %v2221_v13 = vpack.c.bf16 %v1100_v10, %v1099_v34  ;;  %v1049_v15 = vadd.f32 %v1048_v12, %v676_v9  ;;  %2246 = vmatprep.subr.bf16.mxu0 %v2287_v53  ;;  %v1150_v5 = vpop.permute.xlu0 %1149  ;;  %v1155_v10 = vpop.permute.xlu1 %1154 }
 0x25b   :  { %v1102_v16 = vmax.f32 %v1054_v52, 0.0 }
 0x25c   :  { %v1101_v18 = vmax.f32 %v1049_v15, 0.0  ;;  %v2048_v19 = vpop.f32.mrb[36].mxu1  ;;  %1267 = vmatmul.mubr.f32.vlgmr.msra.gmra.mrb[16].mxu0 %v1105_v39  ;;  %2222 = vmatprep.subr.bf16.mxu1 %v2221_v13 }
 0x25d   :  { %v1064_v20 = vadd.f32 %v2048_v19, %v691_v17  ;;  %v1058_v21 = vpop.f32.mrb[37].mxu1  ;;  %2224 = vmatpush3.bf16.msra.mxu1 %v2221_v13  ;;  %1271 = vmatprep.mubr.f32.mxu0 %v1109_v61 }
 0x25e   :  { %v2225_v28 = vpack.c.bf16 %v1102_v16, %v1101_v18  ;;  %v1059_v22 = vadd.f32 %v1058_v21, %v686_v27  ;;  %v1160_v27 = vpop.permute.xlu0 %1159 }
 0x25f   :  { %v1104_v25 = vmax.f32 %v1064_v20, 0.0 }
 0x260   :  { %v1103_v32 = vmax.f32 %v1059_v22, 0.0  ;;  %1272 = vmatmul.mubr.f32.gmra.mrb[18].mxu0 %v1108_v4  ;;  %2226 = vmatprep.subr.bf16.mxu1 %v2225_v28 }
 0x261   :  { %2228 = vmatpush3.bf16.msra.mxu1 %v2225_v28  ;;  %1276 = vmatprep.mubr.f32.mxu0 %v1112_v24 }
 0x262   :  { %v2229_v33 = vpack.c.bf16 %v1104_v25, %v1103_v32 }
 0x264   :  { %1277 = vmatmul.mubr.f32.gmra.mrb[20].mxu0 %v1111_v26  ;;  %2230 = vmatprep.subr.bf16.mxu1 %v2229_v33 }
 0x265   :  { %2232 = vmatpush3.bf16.msra.mxu1 %v2229_v33  ;;  %1281 = vmatprep.mubr.f32.mxu0 %v1115_v29  ;;  %v1165_v29 = vpop.permute.xlu1 %1164 }
 0x266   :  { %2233 = vmatprep.subr.bf16.mxu1 %v2287_v53 }
 0x268   :  { %1282 = vmatmul.mubr.f32.gmra.mrb[22].mxu0 %v1114_v30  ;;  %2062 = vmatmul.mubr.msk.f32.vlgmr.msra.gmra.mrb[38].mxu1 %vm1177_vm6, %v1110_v37 }
 0x269   :  { %1286 = vmatprep.mubr.f32.mxu0 %v1118_v31  ;;  %2064 = vmatprep.mubr.msk.f32.mxu1 %vm1177_vm6, %v1113_v62 }
 0x26c   :  { %1287 = vmatmul.mubr.f32.gmra.mrb[24].mxu0 %v1117_v36  ;;  %2065 = vmatmul.mubr.msk.f32.gmra.mrb[40].mxu1 %vm1177_vm6, %v1116_v38 }
 0x26d   :  { %1291 = vmatprep.mubr.f32.mxu0 %v1121_v40  ;;  %2067 = vmatprep.mubr.msk.f32.mxu1 %vm1177_vm6, %v1119_v43  ;;  %v1170_v43 = vpop.permute.xlu0 %1169 }
 0x270   :  { %1292 = vmatmul.mubr.f32.gmra.mrb[26].mxu0 %v1120_v41  ;;  %2068 = vmatmul.mubr.msk.f32.gmra.mrb[42].mxu1 %vm1177_vm6, %v1122_v44 }
 0x271   :  { %1296 = vmatprep.mubr.f32.mxu0 %v1124_v6  ;;  %2070 = vmatprep.mubr.msk.f32.mxu1 %vm1177_vm6, %v1125_v47 }
 0x274   :  { %1297 = vmatmul.mubr.f32.gmra.mrb[28].mxu0 %v1123_v42  ;;  %2071 = vmatmul.mubr.msk.f32.gmra.mrb[44].mxu1 %vm1177_vm6, %v1128_v51 }
 0x275   :  { %1301 = vmatprep.mubr.f32.mxu0 %v1127_v48  ;;  %2089 = vmatprep.mubr.msk.f32.mxu1 %vm2288_vm7, %v2289_v14 }
 0x278   :  { %1302 = vmatmul.mubr.f32.gmra.mrb[30].mxu0 %v1126_v45 }
 0x279   :  { %2104 = vmatprep.mubr.msk.f32.mxu0 %vm2288_vm7, %v2289_v14 }
 0x32f   :  { %v1851_v54 = vpop.f32.mrb[16].mxu0 }
 0x330   :  { %v1852_v46 = vpop.f32.mrb[17].mxu0 }
 0x331   :  { %v1853_v55 = vadd.f32 %v1852_v46, %v1851_v54  ;;  %v1175_v54 = vpop.permute.xlu1 %1174 }
 0x333   :  { %v1854_v56 = vpop.f32.mrb[18].mxu0  ;;  %v1269_v1 = vadd.f32 %v1853_v55, %v1140_v49 }
 0x334   :  { %v1855_v57 = vpop.f32.mrb[19].mxu0 }
 0x335   :  { %v1856_v58 = vadd.f32 %v1855_v57, %v1854_v56 }
 0x337   :  { %v1857_v23 = vpop.f32.mrb[20].mxu0  ;;  %v1274_v63 = vadd.f32 %v1856_v58, %v1145_v50  ;;  %v1420_v58 = vld [vmem:[%s3052_s7] sm:$0xff] }
 0x338   :  { %v1858_v60 = vpop.f32.mrb[21].mxu0 }
 0x339   :  { %v1859_v59 = vadd.f32 %v1858_v60, %v1857_v23  ;;  %v1422_v23 = vld [vmem:[%s3052_s7 + $0x10] sm:$0xf] }
 0x33b   :  { %v1860_v0 = vpop.f32.mrb[22].mxu0  ;;  %v2063_v35 = vpop.f32.mrb[38].mxu1  ;;  %v1279_v13 = vadd.f32 %v1859_v59, %v1150_v5 }
 0x33c   :  { %v1379_v8 = vadd.f32 %v2063_v35, %v1274_v63  ;;  %v1861_v2 = vpop.f32.mrb[23].mxu0  ;;  %v1373_v3 = vpop.f32.mrb[39].mxu1 }
 0x33d   :  { %v1862_v7 = vadd.f32 %v1861_v2, %v1860_v0  ;;  %v1374_v9 = vadd.f32 %v1373_v3, %v1269_v1  ;;  %v1429_v59 = vpop.permute.xlu0 %1428  ;;  %v1434_v63 = vpop.permute.xlu1 %1433 }
 0x33e   :  { %v1413_v34 = vmax.f32 %v1379_v8, 0.0 }
 0x33f   :  { %v1412_v11 = vmax.f32 %v1374_v9, 0.0  ;;  %v1863_v52 = vpop.f32.mrb[24].mxu0  ;;  %v1284_v12 = vadd.f32 %v1862_v7, %v1155_v10  ;;  %v2066_v39 = vpop.f32.mrb[40].mxu1 }
 0x340   :  { %v1864_v15 = vpop.f32.mrb[25].mxu0  ;;  %v1383_v61 = vpop.f32.mrb[41].mxu1 }
 0x341   :  { %v2234_v16 = vpack.c.bf16 %v1413_v34, %v1412_v11  ;;  %v1389_v17 = vadd.f32 %v2066_v39, %v1284_v12  ;;  %v1865_v18 = vadd.f32 %v1864_v15, %v1863_v52  ;;  %v1384_v19 = vadd.f32 %v1383_v61, %v1279_v13  ;;  %v1439_v3 = vpop.permute.xlu0 %1438  ;;  %v1538_v52 = vld [vmem:[%s3054_s9] sm:$0x1]  ;;  %v1543_v15 = vpop.permute.xlu1 %1542  ;;  %s2261_s9 = scalar_lea.vmem %s1640_s18, 16 }
 0x342   :  { %v1545_v12 = vlaneseq  ;;  %p2262_p0 = scmp.ne.s32.totalorder %s1640_s18, %s2261_s9  ;;  %p2267_p2 = scmp.lt.s32.totalorder %s2265_s6, %s2261_s9 }
 0x343   :  { %v1415_v20 = vmax.f32 %v1389_v17, 0.0  ;;  %v1414_v21 = vmax.f32 %v1384_v19, 0.0  ;;  %v1866_v4 = vpop.f32.mrb[26].mxu0  ;;  %v2069_v28 = vpop.f32.mrb[42].mxu1  ;;  %2235 = vmatpush3.bf16.msra.mxu1 %v2234_v16  ;;  %v1289_v22 = vadd.f32 %v1865_v18, %v1160_v27 }
 0x344   :  { %v1867_v24 = vpop.f32.mrb[27].mxu0  ;;  %v1393_v25 = vpop.f32.mrb[43].mxu1  ;;  %2236 = vmatprep.subr.bf16.mxu1 %v2287_v53  ;;  %v1546_v39 = vshrl.u32 %v1545_v12, 7  ;;  %p2268_p3 = por %p2267_p2, %p2266_p1 }
 0x345   :  { %v2237_v32 = vpack.c.bf16 %v1415_v20, %v1414_v21  ;;  %v1868_v26 = vadd.f32 %v1867_v24, %v1866_v4  ;;  %v1394_v33 = vadd.f32 %v1393_v25, %v1289_v22 }
 0x346   :  { %v1547_v13 = vsub.s32 0, %v1546_v39  ;;  %p2269_p4 = pnand %p2268_p3, %p2262_p0 }
 0x347   :  { %v1294_v30 = vadd.f32 %v1868_v26, %v1165_v29  ;;  %v1869_v37 = vpop.f32.mrb[28].mxu0  ;;  %2238 = vmatpush3.bf16.msra.mxu1 %v2237_v32  ;;  %v2072_v31 = vpop.f32.mrb[44].mxu1  ;;  %v1416_v41 = vmax.f32 %v1394_v33, 0.0 }
 0x348   :  { %v1870_v62 = vpop.f32.mrb[29].mxu0  ;;  %v1403_v36 = vpop.f32.mrb[45].mxu1  ;;  %2239 = vmatprep.subr.bf16.mxu1 %v2287_v53  ;;  %v1548_v61 = vrot.slane %v1543_v15, %v1547_v13 }
 0x349   :  { %v1399_v38 = vadd.f32 %v2069_v28, %v1294_v30  ;;  %v1871_v40 = vadd.f32 %v1870_v62, %v1869_v37 }
 0x34b   :  { %v1417_v44 = vmax.f32 %v1399_v38, 0.0  ;;  %v1872_v6 = vpop.f32.mrb[30].mxu0  ;;  %v1299_v47 = vadd.f32 %v1871_v40, %v1170_v43 }
 0x34c   :  { %v1873_v42 = vpop.f32.mrb[31].mxu0 }
 0x34d   :  { %v2240_v51 = vpack.c.bf16 %v1417_v44, %v1416_v41  ;;  %v1874_v48 = vadd.f32 %v1873_v42, %v1872_v6  ;;  %v1404_v45 = vadd.f32 %v1403_v36, %v1299_v47 }
 0x34f   :  { %v1304_v46 = vadd.f32 %v1874_v48, %v1175_v54  ;;  %2241 = vmatpush3.bf16.msra.mxu1 %v2240_v51  ;;  %v1418_v56 = vmax.f32 %v1404_v45, 0.0 }
 0x350   :  { %2242 = vmatprep.subr.bf16.mxu1 %v2287_v53  ;;  %v1421_v53 = vld [vmem:[%s3052_s7 + $0x8] sm:$0xff] }
 0x351   :  { %v1409_v55 = vadd.f32 %v2072_v31, %v1304_v46 }
 0x353   :  { %v1419_v49 = vmax.f32 %v1409_v55, 0.0 }
 0x355   :  { %v2243_v57 = vpack.c.bf16 %v1419_v49, %v1418_v56 }
 0x357   :  { %2245 = vmatpush3.bf16.msk.msra.mxu1 %vm2244_vm9, %v2243_v57 }
 0x35a   :  { %2090 = vmatmul.mubr.msk.f32.vlgmr.msra.gmra.mrb[46].mxu1 %vm1441_vm10, %v1420_v58 }
 0x35b   :  { %2092 = vmatprep.mubr.msk.f32.mxu1 %vm2288_vm7, %v2289_v14 }
 0x35e   :  { %2093 = vmatmul.mubr.msk.f32.gmra.mrb[48].mxu1 %vm1441_vm10, %v1421_v53 }
 0x35f   :  { %2095 = vmatprep.mubr.msk.f32.mxu1 %vm2288_vm7, %v2289_v14 }
 0x362   :  { %2096 = vmatmul.mubr.msk.f32.gmra.mrb[50].mxu1 %vm1441_vm10, %v1422_v23 }
 0x42d   :  { %v1521_v50 = vpop.f32.mrb[46].mxu1 }
 0x42e   :  { %v2091_v60 = vpop.f32.mrb[47].mxu1  ;;  %v1522_v5 = vadd.f32 %v1521_v50, %v1429_v59 }
 0x430   :  { %v1535_v8 = vmax.f32 %v1522_v5, 0.0 }
 0x431   :  { %v1526_v0 = vpop.f32.mrb[48].mxu1 }
 0x432   :  { %v1527_v35 = vadd.f32 %v1526_v0, %v1434_v63  ;;  %v2094_v1 = vpop.f32.mrb[49].mxu1 }
 0x434   :  { %v1536_v2 = vmax.f32 %v1527_v35, 0.0 }
 0x435   :  { %v1531_v7 = vpop.f32.mrb[50].mxu1 }
 0x436   :  { %v2247_v9 = vpack.c.bf16 %v1536_v2, %v1535_v8  ;;  %v1532_v10 = vadd.f32 %v1531_v7, %v1439_v3  ;;  %v2097_v34 = vpop.f32.mrb[51].mxu1 }
 0x438   :  { %2248 = vmatpush3.bf16.msra.mxu0 %v2247_v9  ;;  %v1537_v11 = vmax.f32 %v1532_v10, 0.0 }
 0x439   :  { %2102 = vmatprep.subr.mxu0 %v2289_v14 }
 0x43c   :  { %2103 = vmatpush3.msk.msra.mxu0 %vm1451_vm8, %v1537_v11 }
 0x43d   :  { %2105 = vmatmul.mubr.msk.f32.vlgmr.msra.gmra.mrb[32].mxu0 %vm1549_vm11, %v1538_v52 }
 0x510   :  { %v1622_v16 = vpop.f32.mrb[32].mxu0 }
 0x511   :  { %v1623_v17 = vadd.f32 %v1622_v16, %v1548_v61  ;;  %v2106_v18 = vpop.f32.mrb[33].mxu0 }
 0x513   :  { %v1732_v19 = vmul.f32 -1.442695, %v1623_v17 }
 0x515   :  { %2257 = vpow2.f32 %v1732_v19 }
 0x51f   :  { %v2258_v14 = vpop.eup %2257 }
 0x520   :  { %v1629_v27 = vadd.f32 1.0, %v2258_v14 }
 0x522   :  { %2259 = vrcp.f32 %v1629_v27 }
 0x52c   :  { %v2260_v20 = vpop.eup %2259 }
 0x52d   :  { %1632 = vst [vmem:[#allocation3] sm:$0x1] %v2260_v20 }
 0x52e   :  { %2272 = shalt.err (!%p2269_p4)
}
 0x52f   :  { %s2273_s8 = scalar_lea.hbm %s3056_s11, 16 }
 0x530   :  { %p2274_p5 = scmp.ne.s32.totalorder %s3056_s11, %s2273_s8  ;;  %p2277_p6 = scmp.lt.u32.totalorder %s2273_s8, %s3056_s11 }
 0x532   :  { %p2279_p7 = pnand %p2277_p6, %p2274_p5 }
 0x534   :  { %2282 = shalt.err (!%p2279_p7)
}
 0x535   :  { %1642 = dma.vmem_to_hbm [thread:$0]  %s1640_s18, 16, %s3056_s11, [#allocation4]  }
 0x536   :  { %2283 = dma.done.wait [#allocation4], 16  }
 0x537   :  { %2284 = vsyncadd [#allocation4], 4294967280 }
 0x538   :  { %1646 = vsyncpa [#allocation4], 1 }

</bundles_post_ra>
